<compile_context>
chip_gen: v6e
topology: v6e:2x2x1
jax: 0.10.0
libtpu: 0.0.40
codegen_flags: <defaults>
</compile_context>

<pallas_src>
import jax
import jax.numpy as jnp
from jax.experimental import pallas as pl
from jax.experimental.pallas import tpu as pltpu

EPS = 1e-5  # PyTorch BatchNorm1d default


def deconv_bn_relu_kernel(x_ref, w_ref, gamma_ref, beta_ref, o_ref):
    # x_ref:     (N*L_out, C_in*K)  bf16  im2col view of the dilated/padded input
    # w_ref:     (C_in*K, C_blk)    bf16  compact ConvTranspose1d weight slice
    # gamma_ref: (1, C_blk)         f32
    # beta_ref:  (1, C_blk)         f32
    # o_ref:     (N*L_out, C_blk)   f32
    #
    # ConvTranspose1d as a single compact matmul (bf16 MXU, f32 accumulate).
    # Conv bias omitted: exactly cancelled by the BN mean subtraction below.
    y = jnp.dot(x_ref[...], w_ref[...], preferred_element_type=jnp.float32)

    # Train-mode BatchNorm1d statistics: per output channel over (N, L_out),
    # i.e. per column of y in this NLC layout — plain column reductions,
    # no indicator matmuls needed.
    inv_count = 1.0 / float(y.shape[0])                       # N * L_out (static)
    mean = jnp.sum(y, axis=0, keepdims=True) * inv_count      # (1, C_blk)
    sq_mean = jnp.sum(y * y, axis=0, keepdims=True) * inv_count
    var = sq_mean - mean * mean                               # biased variance
    inv_std = jax.lax.rsqrt(var + EPS)

    scale = gamma_ref[...] * inv_std                          # (1, C_blk)
    shift = beta_ref[...] - mean * scale                      # (1, C_blk)
    o_ref[...] = jnp.maximum(y * scale + shift, 0.0).astype(o_ref.dtype)


def _im2col_transposed(x, k, stride, padding, l_out):
    """x: (N, C_in, L_in) -> X_e (N*L_out, C_in*K) with
    X_e[n*L_out + t, ci*K + kk] = x[n, ci, (t + padding - kk)/stride]
    when that index is integral and in [0, L_in), else 0.
    (Wrapper-side layout glue; the gather could be moved in-kernel via manual
    DMA for very long sequences.)"""
    n, c_in, l_in = x.shape
    t_idx = jnp.arange(l_out)[:, None]            # (L_out, 1)
    k_idx = jnp.arange(k)[None, :]                # (1, K)
    num = t_idx + padding - k_idx                 # (L_out, K)
    li = num // stride
    valid = (num % stride == 0) & (li >= 0) & (li < l_in)
    li_safe = jnp.clip(li, 0, l_in - 1)
    xg = x[:, :, li_safe]                                      # (N, C_in, L_out, K)
    xg = jnp.where(valid[None, None, :, :], xg, 0.0)
    return xg.transpose(0, 2, 1, 3).reshape(n * l_out, c_in * k)


def deconv_block(x, weight, bias, gamma, beta, stride, padding):
    """Forward of DeConvBlock: ConvTranspose1d + train-mode BatchNorm1d + ReLU.
    x: (N, C_in, L_in) -> (N, C_out, L_out)."""
    del bias  # exactly cancelled by the train-mode BN mean subtraction
    n, c_in, l_in = x.shape
    _, c_out, k = weight.shape
    l_out = (l_in - 1) * stride - 2 * padding + k
    m = n * l_out

    # ---- wrapper-side layout glue (plain JAX) ----
    x_e = _im2col_transposed(x.astype(jnp.float32), k, stride, padding, l_out)
    w2 = weight.astype(jnp.float32).transpose(0, 2, 1).reshape(c_in * k, c_out)
    # bf16 MXU operands; f32 accumulation requested inside the kernel.
    x_e = x_e.astype(jnp.bfloat16)
    w2 = w2.astype(jnp.bfloat16)
    gamma2 = gamma.astype(jnp.float32).reshape(1, c_out)
    beta2 = beta.astype(jnp.float32).reshape(1, c_out)

    # Channel-block grid (lane axis).  BN stats are per-channel, so each block
    # is fully independent -> "parallel" (2-TC sharding on v7x, pipelining
    # everywhere).  Everything here is tiny, so no vmem_limit override needed.
    c_blk = min(c_out, 128)
    grid = (pl.cdiv(c_out, c_blk),)

    out_nlc = pl.pallas_call(
        deconv_bn_relu_kernel,
        out_shape=jax.ShapeDtypeStruct((m, c_out), jnp.float32),
        grid=grid,
        in_specs=[
            pl.BlockSpec((m, c_in * k), lambda j: (0, 0)),      # X_e (shared across channel blocks)
            pl.BlockSpec((c_in * k, c_blk), lambda j: (0, j)),  # compact weight slice
            pl.BlockSpec((1, c_blk), lambda j: (0, j)),         # gamma slice
            pl.BlockSpec((1, c_blk), lambda j: (0, j)),         # beta slice
        ],
        out_specs=pl.BlockSpec((m, c_blk), lambda j: (0, j)),
        compiler_params=pltpu.CompilerParams(
            dimension_semantics=("parallel",)),
    )(x_e, w2, gamma2, beta2)

    # (N*L_out, C_out) "NLC" -> (N, C_out, L_out)
    return out_nlc.reshape(n, l_out, c_out).transpose(0, 2, 1)


def reference_forward(x, weight, bias, gamma, beta, stride, padding):
    """Pure-JAX reference of ConvTranspose1d (with bias) + train-mode
    BatchNorm1d + ReLU — the exact semantics of the PyTorch module."""
    n, c_in, l_in = x.shape
    _, c_out, k = weight.shape
    l_out = (l_in - 1) * stride - 2 * padding + k
    y = jnp.zeros((n, c_out, l_out), jnp.float32)
    for li in range(l_in):
        for kk in range(k):
            t = li * stride - padding + kk
            if 0 <= t < l_out:
                y = y.at[:, :, t].add(jnp.einsum('ni,io->no', x[:, :, li], weight[:, :, kk]))
    y = y + bias[None, :, None]
    mean = y.mean(axis=(0, 2), keepdims=True)
    var = y.var(axis=(0, 2), keepdims=True)  # biased, as PyTorch train-mode BN
    yn = (y - mean) / jnp.sqrt(var + EPS)
    return jnp.maximum(yn * gamma[None, :, None] + beta[None, :, None], 0.0)


if __name__ == "__main__":
    # Small shapes consistent with the module: batch=2, C_in=4, L=16,
    # C_out=8, kernel_size=4, stride=2, padding=1 -> L_out=32.
    N, C_IN, L_IN = 2, 4, 16
    C_OUT, K, STRIDE, PADDING = 8, 4, 2, 1
    L_OUT = (L_IN - 1) * STRIDE - 2 * PADDING + K

    key = jax.random.PRNGKey(0)
    kx, kw, kb, kg, kbt = jax.random.split(key, 5)
    x = jax.random.normal(kx, (N, C_IN, L_IN), jnp.float32)
    # ConvTranspose1d weight shape: (in_channels, out_channels, kernel_size)
    weight = 0.1 * jax.random.normal(kw, (C_IN, C_OUT, K), jnp.float32)
    bias = 0.1 * jax.random.normal(kb, (C_OUT,), jnp.float32)
    gamma = 1.0 + 0.05 * jax.random.normal(kg, (C_OUT,), jnp.float32)
    beta = 0.05 * jax.random.normal(kbt, (C_OUT,), jnp.float32)

    out = deconv_block(x, weight, bias, gamma, beta, STRIDE, PADDING)
    out = jax.block_until_ready(out)
    assert out.shape == (N, C_OUT, L_OUT)

    # Reference on bf16-rounded operands (the kernel feeds bf16 to the MXU with
    # f32 accumulation).  The reference keeps the conv bias, which the kernel
    # folds away — train-mode BN cancels it exactly.
    xq = x.astype(jnp.bfloat16).astype(jnp.float32)
    wq = weight.astype(jnp.bfloat16).astype(jnp.float32)
    ref = reference_forward(xq, wq, bias, gamma, beta, STRIDE, PADDING)
    max_err = float(jnp.max(jnp.abs(out - ref)))
    assert jnp.allclose(out, ref, atol=2e-3, rtol=2e-3), max_err

    print("KERNEL_OK")
</pallas_src>

<mosaic_0001>
module attributes {stable_mosaic.version = 11 : i64} {
  func.func @deconv_bn_relu_kernel(%arg0: i32, %arg1: memref<64x16xbf16, #tpu.memory_space<vmem>>, %arg2: memref<16x8xbf16, #tpu.memory_space<vmem>>, %arg3: memref<1x8xf32, #tpu.memory_space<vmem>>, %arg4: memref<1x8xf32, #tpu.memory_space<vmem>>, %arg5: memref<64x8xf32, #tpu.memory_space<vmem>>) attributes {dimension_semantics = [#tpu.dimension_semantics<parallel>], iteration_bounds = array<i64: 1>, scalar_prefetch = 0 : i64, scratch_operands = 0 : i64, tpu.core_type = #tpu.core_type<tc>, window_params = [{pipeline_mode = #tpu.pipeline_mode<synchronous>, transform_indices = @transform_0, window_bounds = array<i64: 64, 16>}, {transform_indices = @transform_1, window_bounds = array<i64: 16, 8>}, {transform_indices = @transform_2, window_bounds = array<i64: 1, 8>}, {transform_indices = @transform_3, window_bounds = array<i64: 1, 8>}, {transform_indices = @transform_4, window_bounds = array<i64: 64, 8>}]} {
    %c0 = arith.constant 0 : index
    %c0_0 = arith.constant 0 : index
    %0 = vector.load %arg1[%c0, %c0_0] : memref<64x16xbf16, #tpu.memory_space<vmem>>, vector<64x16xbf16>
    %c0_1 = arith.constant 0 : index
    %c0_2 = arith.constant 0 : index
    %1 = vector.load %arg2[%c0_1, %c0_2] : memref<16x8xbf16, #tpu.memory_space<vmem>>, vector<16x8xbf16>
    %cst = arith.constant dense<0.000000e+00> : vector<64x8xf32>
    %2 = tpu.matmul %0, %1, %cst {dimension_numbers = #tpu.dot_dimension_numbers<[1], [0], [0], [1], [0, 0, 1, 1], [], []>} : vector<64x16xbf16>, vector<16x8xbf16>, vector<64x8xf32> -> vector<64x8xf32>
    %cst_3 = arith.constant dense<0.000000e+00> : vector<8xf32>
    %3 = vector.multi_reduction <add>, %2, %cst_3 [0] : vector<64x8xf32> to vector<8xf32>
    %4 = vector.shape_cast %3 : vector<8xf32> to vector<1x8xf32>
    %cst_4 = arith.constant 1.562500e-02 : f32
    %5 = vector.broadcast %cst_4 : f32 to vector<1x8xf32>
    %6 = arith.mulf %4, %5 : vector<1x8xf32>
    %7 = arith.mulf %2, %2 : vector<64x8xf32>
    %cst_5 = arith.constant dense<0.000000e+00> : vector<8xf32>
    %8 = vector.multi_reduction <add>, %7, %cst_5 [0] : vector<64x8xf32> to vector<8xf32>
    %9 = vector.shape_cast %8 : vector<8xf32> to vector<1x8xf32>
    %cst_6 = arith.constant 1.562500e-02 : f32
    %10 = vector.broadcast %cst_6 : f32 to vector<1x8xf32>
    %11 = arith.mulf %9, %10 : vector<1x8xf32>
    %12 = arith.mulf %6, %6 : vector<1x8xf32>
    %13 = arith.subf %11, %12 : vector<1x8xf32>
    %cst_7 = arith.constant 9.99999974E-6 : f32
    %14 = vector.broadcast %cst_7 : f32 to vector<1x8xf32>
    %15 = arith.addf %13, %14 : vector<1x8xf32>
    %16 = math.rsqrt %15 : vector<1x8xf32>
    %c0_8 = arith.constant 0 : index
    %c0_9 = arith.constant 0 : index
    %17 = vector.load %arg3[%c0_8, %c0_9] : memref<1x8xf32, #tpu.memory_space<vmem>>, vector<1x8xf32>
    %18 = arith.mulf %17, %16 : vector<1x8xf32>
    %c0_10 = arith.constant 0 : index
    %c0_11 = arith.constant 0 : index
    %19 = vector.load %arg4[%c0_10, %c0_11] : memref<1x8xf32, #tpu.memory_space<vmem>>, vector<1x8xf32>
    %20 = arith.mulf %6, %18 : vector<1x8xf32>
    %21 = arith.subf %19, %20 : vector<1x8xf32>
    %22 = vector.broadcast %18 : vector<1x8xf32> to vector<64x8xf32>
    %23 = arith.mulf %2, %22 : vector<64x8xf32>
    %24 = vector.broadcast %21 : vector<1x8xf32> to vector<64x8xf32>
    %25 = arith.addf %23, %24 : vector<64x8xf32>
    %cst_12 = arith.constant 0.000000e+00 : f32
    %26 = vector.broadcast %cst_12 : f32 to vector<64x8xf32>
    %27 = arith.maximumf %25, %26 : vector<64x8xf32>
    %c0_13 = arith.constant 0 : index
    %c0_14 = arith.constant 0 : index
    %28 = vector.load %arg5[%c0_13, %c0_14] : memref<64x8xf32, #tpu.memory_space<vmem>>, vector<64x8xf32>
    tpu.vector_store %arg5[%c0_13, %c0_14], %27 {strides = array<i32>} : memref<64x8xf32, #tpu.memory_space<vmem>>, vector<64x8xf32>,
    return
  }
  func.func @transform_0(%arg0: i32) -> (i32, i32) {
    %c0_i32 = arith.constant 0 : i32
    %c0_i32_0 = arith.constant 0 : i32
    %c0_i32_1 = arith.constant 0 : i32
    return %c0_i32, %c0_i32_0 : i32, i32
  }
  func.func @transform_1(%arg0: i32) -> (i32, i32) {
    %c0_i32 = arith.constant 0 : i32
    %c0_i32_0 = arith.constant 0 : i32
    return %c0_i32, %arg0 : i32, i32
  }
  func.func @transform_2(%arg0: i32) -> (i32, i32) {
    %c0_i32 = arith.constant 0 : i32
    %c0_i32_0 = arith.constant 0 : i32
    return %c0_i32, %arg0 : i32, i32
  }
  func.func @transform_3(%arg0: i32) -> (i32, i32) {
    %c0_i32 = arith.constant 0 : i32
    %c0_i32_0 = arith.constant 0 : i32
    return %c0_i32, %arg0 : i32, i32
  }
  func.func @transform_4(%arg0: i32) -> (i32, i32) {
    %c0_i32 = arith.constant 0 : i32
    %c0_i32_0 = arith.constant 0 : i32
    return %c0_i32, %arg0 : i32, i32
  }
}

</mosaic_0001>

<bundles_post_ra>
// kernel: tpu_custom_call.1
= control target key start
LH: loop header
LB: loop body
LE: loop exit
PB: predicated region body
PF: predicated region fallthrough
CT: control target
= control target key end

     0   :  { %vm54_vm0 = vcmask 130048   ;;  %vm132_vm1 = vcmask 64512   ;;  %s417_s1 = inlined_call_operand.vmem [shape: bf16[16,8], index: 1, kind: input, shape index: {}]   ;;  %s418_s0 = inlined_call_operand.vmem [shape: bf16[64,16], index: 0, kind: input, shape index: {}]   ;;  %s419_s2 = inlined_call_operand.vmem [shape: f32[1,8], index: 2, kind: input, shape index: {}]   ;;  %s420_s3 = inlined_call_operand.vmem [shape: f32[1,8], index: 3, kind: input, shape index: {}]   ;;  %s421_s4 = inlined_call_operand.vmem [shape: f32[64,8], index: 4, kind: output, shape index: {}]  }
   0x1   :  { %v268_v0 = vld [vmem:[%s417_s1] sm:$0xff]   ;;  %v270_v2 = vld [vmem:[%s418_s0 + $0x8] sm:$0xff]   ;;  %v271_v3 = vld [vmem:[%s418_s0 + $0x10] sm:$0xff]  }
   0x2   :  { %v269_v1 = vld [vmem:[%s418_s0] sm:$0xff]   ;;  %256 = vmatprep.subr.bf16.mxu0 %v268_v0  ;;  %266 = vmatprep.subr.bf16.mxu1 %v268_v0  ;;  %v272_v4 = vld [vmem:[%s418_s0 + $0x18] sm:$0xff]  }
   0x3   :  { %257 = vmatpush3.bf16.msra.mxu0 %v268_v0  ;;  %267 = vmatpush3.bf16.msra.mxu1 %v268_v0 }
   0x4   :  { %258 = vmatprep.mubr.msk.bf16.mxu0 %vm54_vm0, %v269_v1  ;;  %262 = vmatprep.mubr.msk.bf16.mxu1 %vm54_vm0, %v271_v3 }
   0x6   :  { %259 = vmatmul.mubr.msk.bf16.vlgmr.msra.gmra.mxu0 %vm54_vm0, %v270_v2  ;;  %263 = vmatmul.mubr.msk.bf16.vlgmr.msra.gmra.mxu1 %vm54_vm0, %v272_v4  ;;  %v195_v4 = vlaneseq }
  0xc6   :  { %v315_v5 = vpop.f32.mrf.mxu0  ;;  %v317_v6 = vpop.f32.mrf.mxu1 }
  0xc7   :  { %v157_v13 = vmul.f32 %v315_v5, %v315_v5  ;;  %v136_v18 = vsel %vm132_vm1, %v315_v5, 0.0  ;;  %v161_v35 = vmul.f32 %v317_v6, %v317_v6  ;;  %v144_v40 = vsel %vm132_vm1, %v317_v6, 0.0 }
  0xc8   :  { %v319_v7 = vpop.f32.mrf.mxu0  ;;  %v321_v8 = vpop.f32.mrf.mxu1 }
  0xc9   :  { %v155_v10 = vmul.f32 %v319_v7, %v319_v7  ;;  %v133_v14 = vsel %vm132_vm1, %v319_v7, 0.0  ;;  %v166_v25 = vsel %vm132_vm1, %v157_v13, 0.0  ;;  %v159_v27 = vmul.f32 %v321_v8, %v321_v8  ;;  %v189_v13 = vld [vmem:[%s419_s2] sm:$0x1] }
  0xca   :  { %v323_v9 = vpop.f32.mrf.mxu0  ;;  %v329_v12 = vpop.f32.mrf.mxu1  ;;  %v140_v31 = vsel %vm132_vm1, %v321_v8, 0.0  ;;  %v174_v45 = vsel %vm132_vm1, %v161_v35, 0.0 }
  0xcb   :  { %v163_v19 = vsel %vm132_vm1, %v155_v10, 0.0  ;;  %v158_v20 = vmul.f32 %v323_v9, %v323_v9  ;;  %v138_v26 = vsel %vm132_vm1, %v323_v9, 0.0  ;;  %v170_v36 = vsel %vm132_vm1, %v159_v27, 0.0 }
  0xcc   :  { %v327_v11 = vpop.f32.mrf.mxu0  ;;  %v345_v24 = vpop.f32.mrf.mxu1  ;;  %v162_v41 = vmul.f32 %v329_v12, %v329_v12  ;;  %v146_v46 = vsel %vm132_vm1, %v329_v12, 0.0  ;;  %v196_v10 = vshrl.u32 %v195_v4, 7 }
  0xcd   :  { %v134_v15 = vsel %vm132_vm1, %v327_v11, 0.0  ;;  %v156_v16 = vmul.f32 %v327_v11, %v327_v11  ;;  %v168_v30 = vsel %vm132_vm1, %v158_v20, 0.0  ;;  %v160_v32 = vmul.f32 %v345_v24, %v345_v24 }
  0xce   :  { %v135_v17 = vadd.f32 %v134_v15, %v133_v14  ;;  %v142_v37 = vsel %vm132_vm1, %v345_v24, 0.0  ;;  %v176_v49 = vsel %vm132_vm1, %v162_v41, 0.0  ;;  %v197_v14 = vsub.s32 0, %v196_v10 }
  0xcf   :  { %v164_v21 = vsel %vm132_vm1, %v156_v16, 0.0  ;;  %v172_v42 = vsel %vm132_vm1, %v160_v32, 0.0 }
  0xd0   :  { %v137_v22 = vadd.f32 %v136_v18, %v135_v17  ;;  %v165_v23 = vadd.f32 %v164_v21, %v163_v19  ;;  %v191_v17 = vld [vmem:[%s420_s3] sm:$0x1] }
  0xd2   :  { %v167_v28 = vadd.f32 %v166_v25, %v165_v23  ;;  %v139_v29 = vadd.f32 %v138_v26, %v137_v22 }
  0xd4   :  { %v141_v33 = vadd.f32 %v140_v31, %v139_v29  ;;  %v169_v34 = vadd.f32 %v168_v30, %v167_v28 }
  0xd6   :  { %v143_v38 = vadd.f32 %v142_v37, %v141_v33  ;;  %v171_v39 = vadd.f32 %v170_v36, %v169_v34 }
  0xd8   :  { %v145_v43 = vadd.f32 %v144_v40, %v143_v38  ;;  %v173_v44 = vadd.f32 %v172_v42, %v171_v39 }
  0xda   :  { %v147_v47 = vadd.f32 %v146_v46, %v145_v43  ;;  %v175_v48 = vadd.f32 %v174_v45, %v173_v44 }
  0xdc   :  { %v148_v50 = vrot.slane %v147_v47, 4  ;;  %v177_v51 = vadd.f32 %v176_v49, %v175_v48 }
  0xde   :  { %v149_v52 = vadd.f32 %v148_v50, %v147_v47  ;;  %v178_v53 = vrot.slane %v177_v51, 4 }
  0xe0   :  { %v150_v54 = vrot.slane %v149_v52, 2  ;;  %v179_v55 = vadd.f32 %v178_v53, %v177_v51 }
  0xe2   :  { %v151_v56 = vadd.f32 %v150_v54, %v149_v52  ;;  %v180_v57 = vrot.slane %v179_v55, 2 }
  0xe4   :  { %v152_v58 = vrot.slane %v151_v56, 1  ;;  %v181_v59 = vadd.f32 %v180_v57, %v179_v55 }
  0xe6   :  { %v153_v60 = vadd.f32 %v152_v58, %v151_v56  ;;  %v182_v61 = vrot.slane %v181_v59, 1 }
  0xe8   :  { %v154_v62 = vmul.f32 0.015625, %v153_v60  ;;  %v183_v63 = vadd.f32 %v182_v61, %v181_v59 }
  0xea   :  { %v184_v0 = vmul.f32 0.015625, %v183_v63  ;;  %v185_v1 = vmul.f32 %v154_v62, %v154_v62 }
  0xec   :  { %v186_v2 = vsub.f32 %v184_v0, %v185_v1 }
  0xee   :  { %v187_v3 = vadd.f32 1e-05, %v186_v2 }
  0xf0   :  { %273 = vrsqrt.f32 %v187_v3 }
  0xfd   :  { %v274_v15 = vpop.eup %273 }
  0xfe   :  { %v190_v16 = vmul.f32 %v274_v15, %v189_v13 }
 0x100   :  { %v192_v18 = vmul.f32 %v190_v16, %v154_v62  ;;  %v198_v19 = vrot.slane %v190_v16, %v197_v14 }
 0x102   :  { %v193_v20 = vsub.f32 %v191_v17, %v192_v18  ;;  %v200_v21 = vmul.f32 %v198_v19, %v319_v7  ;;  %v201_v22 = vmul.f32 %v198_v19, %v327_v11  ;;  %v202_v23 = vmul.f32 %v315_v5, %v198_v19 }
 0x103   :  { %v203_v25 = vmul.f32 %v323_v9, %v198_v19  ;;  %v204_v27 = vmul.f32 %v198_v19, %v321_v8  ;;  %v205_v28 = vmul.f32 %v198_v19, %v345_v24  ;;  %v206_v29 = vmul.f32 %v317_v6, %v198_v19 }
 0x104   :  { %v212_v26 = vrot.slane %v193_v20, %v197_v14  ;;  %v207_v30 = vmul.f32 %v329_v12, %v198_v19 }
 0x106   :  { %v214_v31 = vadd.f32 %v212_v26, %v200_v21  ;;  %v215_v32 = vadd.f32 %v212_v26, %v201_v22  ;;  %v216_v33 = vadd.f32 %v212_v26, %v202_v23  ;;  %v217_v34 = vadd.f32 %v212_v26, %v203_v25 }
 0x107   :  { %v218_v7 = vadd.f32 %v212_v26, %v204_v27  ;;  %v219_v35 = vadd.f32 %v212_v26, %v205_v28  ;;  %v220_v11 = vadd.f32 %v212_v26, %v206_v29  ;;  %v221_v36 = vadd.f32 %v212_v26, %v207_v30 }
 0x108   :  { %v222_v5 = vmax.f32 %v214_v31, 0.0  ;;  %v223_v37 = vmax.f32 %v215_v32, 0.0  ;;  %v224_v9 = vmax.f32 %v216_v33, 0.0  ;;  %v225_v38 = vmax.f32 %v217_v34, 0.0 }
 0x109   :  { %v226_v39 = vmax.f32 %v218_v7, 0.0  ;;  %v227_v8 = vmax.f32 %v219_v35, 0.0  ;;  %v228_v40 = vmax.f32 %v220_v11, 0.0  ;;  %v229_v24 = vmax.f32 %v221_v36, 0.0 }
 0x10a   :  { %230 = vst.msk [vmem:[%s421_s4] sm:$0xff] %vm132_vm1, %v222_v5  ;;  %231 = vst.msk [vmem:[%s421_s4 + $0x8] sm:$0xff] %vm132_vm1, %v223_v37 }
 0x10b   :  { %232 = vst.msk [vmem:[%s421_s4 + $0x10] sm:$0xff] %vm132_vm1, %v224_v9  ;;  %233 = vst.msk [vmem:[%s421_s4 + $0x18] sm:$0xff] %vm132_vm1, %v225_v38 }
 0x10c   :  { %234 = vst.msk [vmem:[%s421_s4 + $0x20] sm:$0xff] %vm132_vm1, %v226_v39  ;;  %235 = vst.msk [vmem:[%s421_s4 + $0x28] sm:$0xff] %vm132_vm1, %v227_v8 }
 0x10d   :  { %236 = vst.msk [vmem:[%s421_s4 + $0x30] sm:$0xff] %vm132_vm1, %v228_v40  ;;  %237 = vst.msk [vmem:[%s421_s4 + $0x38] sm:$0xff] %vm132_vm1, %v229_v24 }

</bundles_post_ra>
